<compile_context>
chip_gen: v5e
topology: v5e:2x2
jax: 0.10.0
libtpu: 0.0.40
codegen_flags: <defaults>
</compile_context>

<pallas_src>
import math

import jax
import jax.numpy as jnp
from jax.experimental import pallas as pl
from jax.experimental.pallas import tpu as pltpu

_LANES = 128
_MAX_TILE_ROWS = 4096                 # 4096 x 128 x 4B = 2 MiB per f32 block
_VMEM_LIMIT_BYTES = 32 * 1024 * 1024  # safe on v5e / v6e / v7x


def _reparam_kernel(mu_ref, logvar_ref, eps_ref, z_ref):
    # Compute in f32 regardless of I/O dtype (v5e has no bf16 VPU/EUP; on
    # v6e/v7x the cast is free filler under the DMA).
    mu = mu_ref[...].astype(jnp.float32)
    logvar = logvar_ref[...].astype(jnp.float32)
    eps = eps_ref[...].astype(jnp.float32)
    z_ref[...] = (mu + jnp.exp(0.5 * logvar) * eps).astype(z_ref.dtype)


def _ceil_div(a, b):
    return -(-a // b)


def _min_sublanes(dtype):
    # Minimum sublane granularity per dtype width: (8,128) f32, (16,128) bf16,
    # (32,128) int8/fp8.
    itemsize = jnp.dtype(dtype).itemsize
    return {4: 8, 2: 16, 1: 32}.get(itemsize, 8)


def _to_slab(x, rows, dtype):
    """Flatten x into a lane-dense (rows, 128) slab.

    The reshape of contiguous data is free layout plumbing; a pad (full copy)
    only happens when numel % 128 != 0, and then only by < 128 elements.
    """
    flat = x.reshape(-1).astype(dtype)
    pad = rows * _LANES - flat.shape[0]
    if pad:
        flat = jnp.pad(flat, (0, pad))
    return flat.reshape(rows, _LANES)


def reparameterize(mu, logvar, key=None, trunc=False, threshold=None,
                   epsilon=None):
    """JAX/Pallas equivalent of Reparameterize.forward.

    mu, logvar : arrays of identical shape, e.g. (B, D).
    key        : jax PRNG key (torch.randn_like / truncnorm.rvs analogue).
    trunc      : if True, epsilon ~ truncated normal on [-threshold, threshold].
    epsilon    : optional explicit noise (test mode); bypasses the random draw.
    """
    assert mu.shape == logvar.shape, "mu and logvar must have the same shape"
    shape = logvar.shape
    n = math.prod(shape)
    out_dtype = jnp.result_type(mu.dtype, logvar.dtype)

    if epsilon is None:
        assert key is not None, "need a PRNG key when epsilon is not supplied"
        if trunc:
            assert threshold is not None
            epsilon = jax.random.truncated_normal(
                key, -threshold, threshold, shape=shape, dtype=jnp.float32)
        else:
            epsilon = jax.random.normal(key, shape=shape, dtype=jnp.float32)
    assert epsilon.shape == shape

    sub = _min_sublanes(out_dtype)
    rows = max(_ceil_div(n, _LANES), 1)
    tb = min(_MAX_TILE_ROWS, _ceil_div(rows, sub) * sub)
    grid = (_ceil_div(rows, tb),)   # ragged last tile handled by Pallas masking

    mu2 = _to_slab(mu, rows, out_dtype)
    lv2 = _to_slab(logvar, rows, out_dtype)
    eps2 = _to_slab(epsilon, rows, out_dtype)

    block = pl.BlockSpec((tb, _LANES), lambda i: (i, 0))
    itemsize = jnp.dtype(out_dtype).itemsize
    cost = pl.CostEstimate(
        flops=3 * n,               # scale, fma
        transcendentals=n,         # exp
        bytes_accessed=4 * n * itemsize,  # mu + logvar + eps in, z out
    )

    z2 = pl.pallas_call(
        _reparam_kernel,
        out_shape=jax.ShapeDtypeStruct((rows, _LANES), out_dtype),
        grid=grid,
        in_specs=[block, block, block],
        out_specs=block,
        compiler_params=pltpu.CompilerParams(
            dimension_semantics=("parallel",),
            vmem_limit_bytes=_VMEM_LIMIT_BYTES,
        ),
        cost_estimate=cost,
    )(mu2, lv2, eps2)

    z_flat = z2.reshape(-1)
    if z_flat.shape[0] != n:       # only when numel % 128 != 0
        z_flat = z_flat[:n]
    return z_flat.reshape(shape)


if __name__ == "__main__":
    key = jax.random.PRNGKey(0)
    k_mu, k_lv, k_eps, k_eps_t, k_rng = jax.random.split(key, 5)

    B, D = 2, 32
    mu = jax.random.normal(k_mu, (B, D), dtype=jnp.float32)
    logvar = jax.random.normal(k_lv, (B, D), dtype=jnp.float32) * 0.1

    # 1) Explicit-epsilon test mode: bit-exact check against a pure-JAX ref.
    eps = jax.random.normal(k_eps, (B, D), dtype=jnp.float32)
    z = jax.block_until_ready(reparameterize(mu, logvar, epsilon=eps))
    z_ref = mu + jnp.exp(0.5 * logvar) * eps
    assert z.shape == (B, D)
    assert jnp.allclose(z, z_ref, atol=1e-5, rtol=1e-5)

    # 2) Standard path: epsilon ~ N(0,1) drawn wrapper-side from the key,
    #    exactly reproducible against the same draw.
    z_rng = jax.block_until_ready(reparameterize(mu, logvar, key=k_rng))
    eps_rng = jax.random.normal(k_rng, shape=(B, D), dtype=jnp.float32)
    z_rng_ref = mu + jnp.exp(0.5 * logvar) * eps_rng
    assert jnp.allclose(z_rng, z_rng_ref, atol=1e-5, rtol=1e-5)

    # 3) Truncated-normal path (trunc=True, threshold=2.0).
    thr = 2.0
    z_trunc = jax.block_until_ready(
        reparameterize(mu, logvar, key=k_eps_t, trunc=True, threshold=thr))
    eps_t = jax.random.truncated_normal(k_eps_t, -thr, thr, shape=(B, D),
                                        dtype=jnp.float32)
    z_trunc_ref = mu + jnp.exp(0.5 * logvar) * eps_t
    assert jnp.allclose(z_trunc, z_trunc_ref, atol=1e-5, rtol=1e-5)

    # 4) Latent dim not a multiple of 128 exercises the tail padding + ragged
    #    last tile.
    B2, D2 = 4, 300
    mu_b = jax.random.normal(k_mu, (B2, D2), dtype=jnp.float32)
    lv_b = jax.random.normal(k_lv, (B2, D2), dtype=jnp.float32) * 0.1
    eps_b = jax.random.normal(k_eps, (B2, D2), dtype=jnp.float32)
    z_b = jax.block_until_ready(reparameterize(mu_b, lv_b, epsilon=eps_b))
    z_b_ref = mu_b + jnp.exp(0.5 * lv_b) * eps_b
    assert jnp.allclose(z_b, z_b_ref, atol=1e-5, rtol=1e-5)

    # 5) bf16 end-to-end I/O exercises the dtype-dependent (16,128) tiling;
    #    compute happens in f32 inside the kernel.
    B3, D3 = 8, 128
    mu_h = jax.random.normal(k_mu, (B3, D3), dtype=jnp.float32).astype(jnp.bfloat16)
    lv_h = (jax.random.normal(k_lv, (B3, D3), dtype=jnp.float32) * 0.1).astype(jnp.bfloat16)
    eps_h = jax.random.normal(k_eps, (B3, D3), dtype=jnp.float32).astype(jnp.bfloat16)
    z_h = jax.block_until_ready(reparameterize(mu_h, lv_h, epsilon=eps_h))
    z_h_ref = (mu_h.astype(jnp.float32)
               + jnp.exp(0.5 * lv_h.astype(jnp.float32)) * eps_h.astype(jnp.float32)
               ).astype(jnp.bfloat16)
    assert z_h.dtype == jnp.bfloat16
    assert jnp.allclose(z_h.astype(jnp.float32), z_h_ref.astype(jnp.float32),
                        atol=2e-2, rtol=2e-2)

    print("KERNEL_OK")
</pallas_src>

<mosaic_0001>
module attributes {stable_mosaic.version = 11 : i64} {
  func.func @_reparam_kernel(%arg0: i32, %arg1: memref<8x128xf32, #tpu.memory_space<vmem>>, %arg2: memref<8x128xf32, #tpu.memory_space<vmem>>, %arg3: memref<8x128xf32, #tpu.memory_space<vmem>>, %arg4: memref<8x128xf32, #tpu.memory_space<vmem>>) attributes {dimension_semantics = [#tpu.dimension_semantics<parallel>], iteration_bounds = array<i64: 1>, scalar_prefetch = 0 : i64, scratch_operands = 0 : i64, tpu.core_type = #tpu.core_type<tc>, window_params = [{transform_indices = @transform_0, window_bounds = array<i64: 8, 128>}, {transform_indices = @transform_1, window_bounds = array<i64: 8, 128>}, {transform_indices = @transform_2, window_bounds = array<i64: 8, 128>}, {transform_indices = @transform_3, window_bounds = array<i64: 8, 128>}]} {
    %c0 = arith.constant 0 : index
    %c0_0 = arith.constant 0 : index
    %0 = vector.load %arg1[%c0, %c0_0] : memref<8x128xf32, #tpu.memory_space<vmem>>, vector<8x128xf32>
    %c0_1 = arith.constant 0 : index
    %c0_2 = arith.constant 0 : index
    %1 = vector.load %arg2[%c0_1, %c0_2] : memref<8x128xf32, #tpu.memory_space<vmem>>, vector<8x128xf32>
    %c0_3 = arith.constant 0 : index
    %c0_4 = arith.constant 0 : index
    %2 = vector.load %arg3[%c0_3, %c0_4] : memref<8x128xf32, #tpu.memory_space<vmem>>, vector<8x128xf32>
    %cst = arith.constant 5.000000e-01 : f32
    %3 = vector.broadcast %cst : f32 to vector<8x128xf32>
    %4 = arith.mulf %3, %1 : vector<8x128xf32>
    %5 = math.exp %4 : vector<8x128xf32>
    %6 = arith.mulf %5, %2 : vector<8x128xf32>
    %7 = arith.addf %0, %6 : vector<8x128xf32>
    %c0_5 = arith.constant 0 : index
    %c0_6 = arith.constant 0 : index
    %8 = vector.load %arg4[%c0_5, %c0_6] : memref<8x128xf32, #tpu.memory_space<vmem>>, vector<8x128xf32>
    tpu.vector_store %arg4[%c0_5, %c0_6], %7 {strides = array<i32>} : memref<8x128xf32, #tpu.memory_space<vmem>>, vector<8x128xf32>,
    return
  }
  func.func @transform_0(%arg0: i32) -> (i32, i32) {
    %c0_i32 = arith.constant 0 : i32
    %c0_i32_0 = arith.constant 0 : i32
    return %arg0, %c0_i32 : i32, i32
  }
  func.func @transform_1(%arg0: i32) -> (i32, i32) {
    %c0_i32 = arith.constant 0 : i32
    %c0_i32_0 = arith.constant 0 : i32
    return %arg0, %c0_i32 : i32, i32
  }
  func.func @transform_2(%arg0: i32) -> (i32, i32) {
    %c0_i32 = arith.constant 0 : i32
    %c0_i32_0 = arith.constant 0 : i32
    return %arg0, %c0_i32 : i32, i32
  }
  func.func @transform_3(%arg0: i32) -> (i32, i32) {
    %c0_i32 = arith.constant 0 : i32
    %c0_i32_0 = arith.constant 0 : i32
    return %arg0, %c0_i32 : i32, i32
  }
}

</mosaic_0001>

<bundles_post_ra>
// kernel: tpu_custom_call.1
= control target key start
LH: loop header
LB: loop body
LE: loop exit
PB: predicated region body
PF: predicated region fallthrough
CT: control target
= control target key end

     0   :  { %8 = vsyncpa [#allocation3], 0  ;;  %s207_s0 = inlined_call_operand.hbm [shape: f32[1,128], index: 0, kind: input, shape index: {}]   ;;  %s208_s1 = inlined_call_operand.hbm [shape: f32[1,128], index: 1, kind: input, shape index: {}]   ;;  %s209_s2 = inlined_call_operand.vmem [shape: f32[1,128], index: 2, kind: input, shape index: {}]   ;;  %s210_s3 = inlined_call_operand.hbm [shape: f32[1,128], index: 3, kind: output, shape index: {}]  }
   0x1   :  { %9 = vsyncpa [#allocation6], 0 }
   0x2   :  { %10 = vsyncpa [#allocation4], 0 }
   0x3   :  { %14 = vsyncadd [#allocation3], 112  ;;  %s15_s14 = sshll.u32 %s207_s0, 4  ;;  %s161_s15 = smov [#allocation2]   ;;  %s16_s14 = int_to_ptr.hbm [resolvable:$true] %s15_s14 }
   0x4   :  { %s17_s16 = sshll.u32 %s161_s15, 4  ;;  %s162_s17 = smov 16   ;;  %s18_s16 = int_to_ptr.vmem [resolvable:$true] %s17_s16 }
   0x5   :  { %s163_s18 = smov 1  }
   0x6   :  { %23 = dma.hbm_to_vmem [thread:$0]  %s16_s14, 16, %s18_s16, [#allocation3], %s162_s17, %s162_s17, %s163_s18  }
   0x7   :  { %27 = vsyncadd [#allocation6], 112  ;;  %s28_s21 = sshll.u32 %s208_s1, 4  ;;  %s164_s22 = smov [#allocation5]   ;;  %s29_s21 = int_to_ptr.hbm [resolvable:$true] %s28_s21 }
   0x8   :  { %s30_s23 = sshll.u32 %s164_s22, 4  ;;  %s31_s23 = int_to_ptr.vmem [resolvable:$true] %s30_s23 }
   0x9   :  { %36 = dma.hbm_to_vmem [thread:$0]  %s29_s21, 16, %s31_s23, [#allocation6], %s162_s17, %s162_s17, %s163_s18  }
   0xa   :  { %155 = dma.done.wait [#allocation3], 128  }
   0xb   :  { %156 = vsyncadd [#allocation3], 4294967168 }
   0xc   :  { %157 = dma.done.wait [#allocation6], 128  }
   0xd   :  { %158 = vsyncadd [#allocation6], 4294967168  ;;  %v48_v0 = vld [vmem:[#allocation5] sm:$0xff]  ;;  %v49_v3 = vld [vmem:[%s209_s2] sm:$0xff] }
   0xe   :  { %v50_v1 = vmul.f32 0.5, %v48_v0  ;;  %v47_v5 = vld [vmem:[#allocation2] sm:$0xff] }
  0x10   :  { %v51_v2 = vmul.f32 1.442695, %v50_v1 }
  0x12   :  { %81 = vpow2.f32 %v51_v2 }
  0x18   :  { %v82_v4 = vpop.eup %81 }
  0x19   :  { %v53_v6 = vmul.f32 %v82_v4, %v49_v3 }
  0x1b   :  { %v54_v7 = vadd.f32 %v53_v6, %v47_v5 }
  0x1d   :  { %55 = vst [vmem:[#allocation7] sm:$0xff] %v54_v7 }
  0x1e   :  { %59 = vsyncadd [#allocation4], 112  ;;  %s62_s26 = sshll.u32 %s210_s3, 4  ;;  %s165_s27 = smov [#allocation7]   ;;  %s63_s26 = int_to_ptr.hbm [resolvable:$true] %s62_s26 }
  0x1f   :  { %s60_s28 = sshll.u32 %s165_s27, 4  ;;  %s61_s28 = int_to_ptr.vmem [resolvable:$true] %s60_s28 }
  0x20   :  { %68 = dma.vmem_to_hbm [thread:$0]  %s61_s28, 16, %s63_s26, [#allocation4], %s162_s17, %s162_s17, %s163_s18  }
  0x21   :  { %159 = dma.done.wait [#allocation4], 128  }
  0x22   :  { %160 = vsyncadd [#allocation4], 4294967168 }
  0x23   :  { %73 = vsyncpa [#allocation3], 1 }
  0x24   :  { %74 = vsyncpa [#allocation6], 1 }
  0x25   :  { %75 = vsyncpa [#allocation4], 1 }

</bundles_post_ra>
